<compile_context>
chip_gen: v6e
topology: v6e:2x2x1
jax: 0.10.0
libtpu: 0.0.40
codegen_flags: <defaults>
</compile_context>

<pallas_src>
import functools

import jax
import jax.numpy as jnp
from jax import lax
from jax.experimental import pallas as pl
from jax.experimental.pallas import tpu as pltpu


def _round_up(x: int, m: int) -> int:
    return (x + m - 1) // m * m


def _teq_kernel(x_ref, w_ref, alpha_ref, bias_ref, o_ref,
                wq_ref, inv_alpha_ref, *, num_bits, mxu_dtype):
    """Grid = (n_tiles, m_tiles); m (axis 1) is the inner, sequential axis.

    x_ref         : (tm, K)  f32  activation tile (changes with m)
    w_ref         : (tn, K)  f32  weight tile (changes with n only)
    alpha_ref     : (1, K)   f32  per-input-channel TEQ scale
    bias_ref      : (1, tn)  f32
    o_ref         : (tm, tn) f32
    wq_ref        : (K, tn)  mxu_dtype  cached fake-quant weight, transposed
    inv_alpha_ref : (1, K)   f32        cached 1 / clip(alpha, 1e-5)
    """
    m_idx = pl.program_id(1)

    # Weight fake-quant (and 1/alpha) depend only on the n tile: compute once
    # per n tile and cache the MXU-ready transposed result in VMEM scratch.
    @pl.when(m_idx == 0)
    def _quantize_weight_tile():
        alpha = jnp.maximum(alpha_ref[...], 1e-5)                     # (1, K)
        inv_alpha_ref[...] = 1.0 / alpha

        w = w_ref[...] * alpha                                        # (tn, K)
        maxq = jnp.float32(2 ** num_bits - 1)
        wmin = jnp.minimum(jnp.min(w, axis=1, keepdims=True), 0.0)    # (tn, 1)
        wmax = jnp.maximum(jnp.max(w, axis=1, keepdims=True), 0.0)    # (tn, 1)
        both_zero = jnp.logical_and(wmin == 0.0, wmax == 0.0)
        wmin = jnp.where(both_zero, -1.0, wmin)
        wmax = jnp.where(both_zero, 1.0, wmax)
        scale = (wmax - wmin) / maxq                                  # (tn, 1)
        zp = jnp.round(-wmin / scale)                                 # (tn, 1)
        # Exact divides here are amortized over all M tiles of this n tile.
        q = jnp.clip(jnp.round(w / scale) + zp, 0.0, maxq)
        w_q = scale * (q - zp)                                        # (tn, K)
        # Store transposed so the matmul consumes a (K, tn) RHS directly
        # (no per-step XLU transpose) and the output store is lane-dense in n.
        wq_ref[...] = w_q.T.astype(mxu_dtype)

    # Hot loop: scale the activation tile (single multiply) and feed the MXU.
    x_s = (x_ref[...] * inv_alpha_ref[...]).astype(mxu_dtype)         # (tm, K)
    y = jnp.dot(x_s, wq_ref[...], preferred_element_type=jnp.float32)  # (tm, tn)
    o_ref[...] = (y + bias_ref[...]).astype(o_ref.dtype)


def teq_linear_fake_quant(x, weight, bias, alpha, *, num_bits=4,
                          block_m=256, block_n=256,
                          mxu_dtype=jnp.bfloat16):
    """TEQLinearFakeQuant forward.

    x      : (..., K) f32
    weight : (N, K)   f32   (PyTorch linear layout: out_features x in_features)
    bias   : (N,)     f32
    alpha  : (K,)     f32   trainable TEQ scale

    block_m / block_n: output tile sizes (multiples of 8 / 128; 128 is a good
    choice on v5e, 256 on v6e/v7x). mxu_dtype=jnp.float32 gives a full-f32
    matmul path; the default bf16 path keeps f32 accumulation on the MXU.
    """
    orig_shape = x.shape
    K = orig_shape[-1]
    N = weight.shape[0]

    x2d = x.reshape(-1, K).astype(jnp.float32)
    M = x2d.shape[0]

    # ---- padding / tile selection (zero padding is inert for this quantizer)
    K_pad = _round_up(K, 128)
    tm = min(block_m, _round_up(M, 8))
    M_pad = _round_up(M, tm)
    tn = min(block_n, _round_up(N, 128))
    N_pad = _round_up(N, tn)

    if M_pad != M or K_pad != K:
        x2d = jnp.pad(x2d, ((0, M_pad - M), (0, K_pad - K)))
    w2d = weight.astype(jnp.float32)
    if N_pad != N or K_pad != K:
        w2d = jnp.pad(w2d, ((0, N_pad - N), (0, K_pad - K)))
    alpha2d = alpha.astype(jnp.float32).reshape(1, K)
    if K_pad != K:
        # Padded channels have zero weight/activation; any alpha >= 1e-5 works.
        alpha2d = jnp.pad(alpha2d, ((0, 0), (0, K_pad - K)), constant_values=1.0)
    bias2d = bias.astype(jnp.float32).reshape(1, N)
    if N_pad != N:
        bias2d = jnp.pad(bias2d, ((0, 0), (0, N_pad - N)))

    grid = (N_pad // tn, M_pad // tm)   # n outer (parallel), m inner (sequential)

    mxu_itemsize = 2 if mxu_dtype in (jnp.bfloat16, jnp.float16) else 4
    vmem_est = (
        2 * 4 * (tm * K_pad + tn * K_pad + tm * tn)    # double-buffered x, w, out
        + 2 * 4 * (K_pad + tn)                          # alpha, bias
        + mxu_itemsize * K_pad * tn + 4 * K_pad         # scratch (w_q^T, 1/alpha)
    )
    vmem_limit = max(32 * 1024 * 1024, int(vmem_est * 5 // 4))

    kernel = functools.partial(_teq_kernel, num_bits=num_bits, mxu_dtype=mxu_dtype)

    out = pl.pallas_call(
        kernel,
        out_shape=jax.ShapeDtypeStruct((M_pad, N_pad), jnp.float32),
        grid=grid,
        in_specs=[
            pl.BlockSpec((tm, K_pad), lambda n, m: (m, 0)),    # x
            pl.BlockSpec((tn, K_pad), lambda n, m: (n, 0)),    # weight
            pl.BlockSpec((1, K_pad), lambda n, m: (0, 0)),     # alpha
            pl.BlockSpec((1, tn), lambda n, m: (0, n)),        # bias
        ],
        out_specs=pl.BlockSpec((tm, tn), lambda n, m: (m, n)),
        scratch_shapes=[
            pltpu.VMEM((K_pad, tn), mxu_dtype),     # cached w_q^T
            pltpu.VMEM((1, K_pad), jnp.float32),    # cached 1/alpha
        ],
        compiler_params=pltpu.CompilerParams(
            dimension_semantics=("parallel", "arbitrary"),
            vmem_limit_bytes=vmem_limit,
        ),
    )(x2d, w2d, alpha2d, bias2d)

    out = out[:M, :N]
    return out.reshape(orig_shape[:-1] + (N,))


def _reference(x, weight, bias, alpha, num_bits=4, cast_dtype=None):
    """Pure-JAX reference mirroring the PyTorch module (group_size=-1, asym)."""
    a = jnp.maximum(alpha, 1e-5)
    xs = x / a
    w = weight * a[None, :]
    maxq = float(2 ** num_bits - 1)
    wmin = jnp.minimum(jnp.min(w, axis=1, keepdims=True), 0.0)
    wmax = jnp.maximum(jnp.max(w, axis=1, keepdims=True), 0.0)
    bz = jnp.logical_and(wmin == 0.0, wmax == 0.0)
    wmin = jnp.where(bz, -1.0, wmin)
    wmax = jnp.where(bz, 1.0, wmax)
    scale = (wmax - wmin) / maxq
    zp = jnp.round(-wmin / scale)
    q = jnp.clip(jnp.round(w / scale) + zp, 0.0, maxq)
    w_q = scale * (q - zp)
    if cast_dtype is not None:   # mimic the kernel's MXU operand dtype
        xs = xs.astype(cast_dtype).astype(jnp.float32)
        w_q = w_q.astype(cast_dtype).astype(jnp.float32)
    y = jnp.einsum("...k,nk->...n", xs, w_q,
                   precision=lax.Precision.HIGHEST,
                   preferred_element_type=jnp.float32)
    return y + bias


if __name__ == "__main__":
    # ---- Test 1: small module-like shapes, single-tile grid ---------------
    batch, seq, K, N = 2, 8, 32, 64
    key = jax.random.PRNGKey(0)
    kx, kw, kb, ka = jax.random.split(key, 4)
    x = jax.random.normal(kx, (batch, seq, K), dtype=jnp.float32)
    weight = jax.random.normal(kw, (N, K), dtype=jnp.float32) * 0.1
    bias = jax.random.normal(kb, (N,), dtype=jnp.float32) * 0.1
    alpha = jnp.abs(jax.random.normal(ka, (K,), dtype=jnp.float32)) + 0.5

    y_ref = _reference(x, weight, bias, alpha, num_bits=4)

    # full-f32 MXU path: semantic fidelity vs the f32 reference
    y_f32 = jax.block_until_ready(
        teq_linear_fake_quant(x, weight, bias, alpha, num_bits=4,
                              mxu_dtype=jnp.float32))
    assert y_f32.shape == (batch, seq, N)
    assert bool(jnp.allclose(y_f32, y_ref, atol=1e-2, rtol=1e-2)), "f32 path mismatch"

    # default fast path: bf16 MXU operands, f32 accumulation
    y_bf16 = jax.block_until_ready(
        teq_linear_fake_quant(x, weight, bias, alpha, num_bits=4))
    assert y_bf16.shape == (batch, seq, N)
    assert bool(jnp.allclose(y_bf16, y_ref, atol=3e-2, rtol=3e-2)), "bf16 path mismatch"

    # ---- Test 2: multi-tile grid with M / N / K padding --------------------
    batch2, seq2, K2, N2 = 3, 70, 200, 320
    k2 = jax.random.split(jax.random.PRNGKey(0), 4)
    x2 = jax.random.normal(k2[0], (batch2, seq2, K2), dtype=jnp.float32)
    w2 = jax.random.normal(k2[1], (N2, K2), dtype=jnp.float32) * 0.1
    b2 = jax.random.normal(k2[2], (N2,), dtype=jnp.float32) * 0.1
    a2 = jnp.abs(jax.random.normal(k2[3], (K2,), dtype=jnp.float32)) + 0.5

    y2 = jax.block_until_ready(
        teq_linear_fake_quant(x2, w2, b2, a2, num_bits=4,
                              block_m=128, block_n=128))
    y2_ref = _reference(x2, w2, b2, a2, num_bits=4, cast_dtype=jnp.bfloat16)
    assert y2.shape == (batch2, seq2, N2)
    assert bool(jnp.allclose(y2, y2_ref, atol=5e-3, rtol=5e-3)), "tiled path mismatch"

    print("KERNEL_OK")
</pallas_src>

<mosaic_0001>
module attributes {stable_mosaic.version = 11 : i64} {
  func.func @_teq_kernel(%arg0: i32, %arg1: i32, %arg2: memref<16x128xf32, #tpu.memory_space<vmem>>, %arg3: memref<128x128xf32, #tpu.memory_space<vmem>>, %arg4: memref<1x128xf32, #tpu.memory_space<vmem>>, %arg5: memref<1x128xf32, #tpu.memory_space<vmem>>, %arg6: memref<16x128xf32, #tpu.memory_space<vmem>>, %arg7: memref<128x128xf32, #tpu.memory_space<vmem>>, %arg8: memref<1x128xf32, #tpu.memory_space<vmem>>) attributes {dimension_semantics = [#tpu.dimension_semantics<parallel>, #tpu.dimension_semantics<arbitrary>], iteration_bounds = array<i64: 1, 1>, scalar_prefetch = 0 : i64, scratch_operands = 2 : i64, tpu.core_type = #tpu.core_type<tc>, window_params = [{transform_indices = @transform_0, window_bounds = array<i64: 16, 128>}, {transform_indices = @transform_1, window_bounds = array<i64: 128, 128>}, {pipeline_mode = #tpu.pipeline_mode<synchronous>, transform_indices = @transform_2, window_bounds = array<i64: 1, 128>}, {transform_indices = @transform_3, window_bounds = array<i64: 1, 128>}, {transform_indices = @transform_4, window_bounds = array<i64: 16, 128>}]} {
    %c0_i32 = arith.constant 0 : i32
    %0 = arith.cmpi eq, %arg1, %c0_i32 : i32
    %1 = arith.extui %0 : i1 to i32
    %c0_i32_0 = arith.constant 0 : i32
    %2 = arith.cmpi ne, %1, %c0_i32_0 : i32
    scf.if %2 {
      %c0_10 = arith.constant 0 : index
      %c0_11 = arith.constant 0 : index
      %13 = vector.load %arg4[%c0_10, %c0_11] : memref<1x128xf32, #tpu.memory_space<vmem>>, vector<1x128xf32>
      %cst_12 = arith.constant 9.99999974E-6 : f32
      %14 = vector.broadcast %cst_12 : f32 to vector<1x128xf32>
      %15 = arith.maximumf %13, %14 : vector<1x128xf32>
      %cst_13 = arith.constant 1.000000e+00 : f32
      %16 = vector.broadcast %cst_13 : f32 to vector<1x128xf32>
      %17 = arith.divf %16, %15 : vector<1x128xf32>
      %c0_14 = arith.constant 0 : index
      %c0_15 = arith.constant 0 : index
      %18 = vector.load %arg8[%c0_14, %c0_15] : memref<1x128xf32, #tpu.memory_space<vmem>>, vector<1x128xf32>
      tpu.vector_store %arg8[%c0_14, %c0_15], %17 {strides = array<i32>} : memref<1x128xf32, #tpu.memory_space<vmem>>, vector<1x128xf32>,
      %c0_16 = arith.constant 0 : index
      %c0_17 = arith.constant 0 : index
      %19 = vector.load %arg3[%c0_16, %c0_17] : memref<128x128xf32, #tpu.memory_space<vmem>>, vector<128x128xf32>
      %20 = vector.broadcast %15 : vector<1x128xf32> to vector<128x128xf32>
      %21 = arith.mulf %19, %20 : vector<128x128xf32>
      %cst_18 = arith.constant dense<0x7F800000> : vector<128xf32>
      %22 = vector.multi_reduction <minimumf>, %21, %cst_18 [1] : vector<128x128xf32> to vector<128xf32>
      %23 = vector.shape_cast %22 : vector<128xf32> to vector<128x1xf32>
      %cst_19 = arith.constant 0.000000e+00 : f32
      %24 = vector.broadcast %cst_19 : f32 to vector<128x1xf32>
      %25 = arith.minimumf %23, %24 : vector<128x1xf32>
      %cst_20 = arith.constant dense<0xFF800000> : vector<128xf32>
      %26 = vector.multi_reduction <maximumf>, %21, %cst_20 [1] : vector<128x128xf32> to vector<128xf32>
      %27 = vector.shape_cast %26 : vector<128xf32> to vector<128x1xf32>
      %cst_21 = arith.constant 0.000000e+00 : f32
      %28 = vector.broadcast %cst_21 : f32 to vector<128x1xf32>
      %29 = arith.maximumf %27, %28 : vector<128x1xf32>
      %cst_22 = arith.constant 0.000000e+00 : f32
      %30 = vector.broadcast %cst_22 : f32 to vector<128x1xf32>
      %31 = arith.cmpf oeq, %25, %30 : vector<128x1xf32>
      %cst_23 = arith.constant 0.000000e+00 : f32
      %32 = vector.broadcast %cst_23 : f32 to vector<128x1xf32>
      %33 = arith.cmpf oeq, %29, %32 : vector<128x1xf32>
      %34 = arith.andi %31, %33 : vector<128x1xi1>
      %cst_24 = arith.constant -1.000000e+00 : f32
      %35 = vector.broadcast %cst_24 : f32 to vector<128x1xf32>
      %36 = arith.select %34, %35, %25 : vector<128x1xi1>, vector<128x1xf32>
      %cst_25 = arith.constant 1.000000e+00 : f32
      %37 = vector.broadcast %cst_25 : f32 to vector<128x1xf32>
      %38 = arith.select %34, %37, %29 : vector<128x1xi1>, vector<128x1xf32>
      %39 = arith.subf %38, %36 : vector<128x1xf32>
      %cst_26 = arith.constant 1.500000e+01 : f32
      %40 = vector.broadcast %cst_26 : f32 to vector<128x1xf32>
      %41 = arith.divf %39, %40 : vector<128x1xf32>
      %cst_27 = arith.constant 0.000000e+00 : f32
      %42 = vector.broadcast %cst_27 : f32 to vector<128x1xf32>
      %43 = arith.subf %42, %36 : vector<128x1xf32>
      %44 = arith.divf %43, %41 : vector<128x1xf32>
      %45 = math.roundeven %44 : vector<128x1xf32>
      %46 = vector.broadcast %41 : vector<128x1xf32> to vector<128x128xf32>
      %47 = arith.divf %21, %46 : vector<128x128xf32>
      %48 = math.roundeven %47 : vector<128x128xf32>
      %49 = vector.broadcast %45 : vector<128x1xf32> to vector<128x128xf32>
      %50 = arith.addf %48, %49 : vector<128x128xf32>
      %cst_28 = arith.constant 0.000000e+00 : f32
      %cst_29 = arith.constant 1.500000e+01 : f32
      %51 = vector.broadcast %cst_28 : f32 to vector<128x128xf32>
      %52 = arith.maximumf %51, %50 : vector<128x128xf32>
      %53 = vector.broadcast %cst_29 : f32 to vector<128x128xf32>
      %54 = arith.minimumf %53, %52 : vector<128x128xf32>
      %55 = vector.broadcast %45 : vector<128x1xf32> to vector<128x128xf32>
      %56 = arith.subf %54, %55 : vector<128x128xf32>
      %57 = vector.broadcast %41 : vector<128x1xf32> to vector<128x128xf32>
      %58 = arith.mulf %57, %56 : vector<128x128xf32>
      %59 = tpu.transpose %58, [1, 0] : vector<128x128xf32> -> vector<128x128xf32>
      %c0_30 = arith.constant 0 : index
      %c0_31 = arith.constant 0 : index
      %60 = vector.load %arg7[%c0_30, %c0_31] : memref<128x128xf32, #tpu.memory_space<vmem>>, vector<128x128xf32>
      tpu.vector_store %arg7[%c0_30, %c0_31], %59 {strides = array<i32>} : memref<128x128xf32, #tpu.memory_space<vmem>>, vector<128x128xf32>,
    } else {
    }
    %c0 = arith.constant 0 : index
    %c0_1 = arith.constant 0 : index
    %3 = vector.load %arg2[%c0, %c0_1] : memref<16x128xf32, #tpu.memory_space<vmem>>, vector<16x128xf32>
    %c0_2 = arith.constant 0 : index
    %c0_3 = arith.constant 0 : index
    %4 = vector.load %arg8[%c0_2, %c0_3] : memref<1x128xf32, #tpu.memory_space<vmem>>, vector<1x128xf32>
    %5 = vector.broadcast %4 : vector<1x128xf32> to vector<16x128xf32>
    %6 = arith.mulf %3, %5 : vector<16x128xf32>
    %c0_4 = arith.constant 0 : index
    %c0_5 = arith.constant 0 : index
    %7 = vector.load %arg7[%c0_4, %c0_5] : memref<128x128xf32, #tpu.memory_space<vmem>>, vector<128x128xf32>
    %cst = arith.constant dense<0.000000e+00> : vector<16x128xf32>
    %8 = tpu.matmul %6, %7, %cst {dimension_numbers = #tpu.dot_dimension_numbers<[1], [0], [0], [1], [0, 0, 1, 1], [], []>} : vector<16x128xf32>, vector<128x128xf32>, vector<16x128xf32> -> vector<16x128xf32>
    %c0_6 = arith.constant 0 : index
    %c0_7 = arith.constant 0 : index
    %9 = vector.load %arg5[%c0_6, %c0_7] : memref<1x128xf32, #tpu.memory_space<vmem>>, vector<1x128xf32>
    %10 = vector.broadcast %9 : vector<1x128xf32> to vector<16x128xf32>
    %11 = arith.addf %8, %10 : vector<16x128xf32>
    %c0_8 = arith.constant 0 : index
    %c0_9 = arith.constant 0 : index
    %12 = vector.load %arg6[%c0_8, %c0_9] : memref<16x128xf32, #tpu.memory_space<vmem>>, vector<16x128xf32>
    tpu.vector_store %arg6[%c0_8, %c0_9], %11 {strides = array<i32>} : memref<16x128xf32, #tpu.memory_space<vmem>>, vector<16x128xf32>,
    return
  }
  func.func @transform_0(%arg0: i32, %arg1: i32) -> (i32, i32) {
    %c0_i32 = arith.constant 0 : i32
    %c0_i32_0 = arith.constant 0 : i32
    return %arg1, %c0_i32 : i32, i32
  }
  func.func @transform_1(%arg0: i32, %arg1: i32) -> (i32, i32) {
    %c0_i32 = arith.constant 0 : i32
    %c0_i32_0 = arith.constant 0 : i32
    return %arg0, %c0_i32 : i32, i32
  }
  func.func @transform_2(%arg0: i32, %arg1: i32) -> (i32, i32) {
    %c0_i32 = arith.constant 0 : i32
    %c0_i32_0 = arith.constant 0 : i32
    %c0_i32_1 = arith.constant 0 : i32
    return %c0_i32, %c0_i32_0 : i32, i32
  }
  func.func @transform_3(%arg0: i32, %arg1: i32) -> (i32, i32) {
    %c0_i32 = arith.constant 0 : i32
    %c0_i32_0 = arith.constant 0 : i32
    return %c0_i32, %arg0 : i32, i32
  }
  func.func @transform_4(%arg0: i32, %arg1: i32) -> (i32, i32) {
    %c0_i32 = arith.constant 0 : i32
    return %arg1, %arg0 : i32, i32
  }
}

</mosaic_0001>

<bundles_post_ra>
// kernel: tpu_custom_call.1
= control target key start
LH: loop header
LB: loop body
LE: loop exit
PB: predicated region body
PF: predicated region fallthrough
CT: control target
= control target key end

     0   :  { %9 = vsyncpa [#allocation5], 0  ;;  %s1642_s0 = inlined_call_operand.hbm [shape: f32[16,128], index: 0, kind: input, shape index: {}]   ;;  %s1643_s1 = inlined_call_operand.hbm [shape: f32[128,128], index: 1, kind: input, shape index: {}]   ;;  %s1644_s2 = inlined_call_operand.vmem [shape: f32[1,128], index: 2, kind: input, shape index: {}]   ;;  %s1645_s3 = inlined_call_operand.vmem [shape: f32[1,128], index: 3, kind: input, shape index: {}]   ;;  %s1646_s4 = inlined_call_operand.hbm [shape: f32[16,128], index: 4, kind: output, shape index: {}]  }
   0x1   :  { %10 = vsyncpa [#allocation8], 0 }
   0x2   :  { %11 = vsyncpa [#allocation6], 0  ;;  %s1071_s15 = smov [#allocation4]  }
   0x3   :  { %s17_s16 = sshll.u32 %s1071_s15, 4  ;;  %s18_s16 = int_to_ptr.vmem [resolvable:$true] %s17_s16 }
   0x4   :  { %s1013_s17 = scalar_lea.vmem %s18_s16, 256  ;;  %p1018_p1 = scmp.lt.s32.totalorder %s18_s16, %s18_s16 }
   0x5   :  { %p1014_p0 = scmp.ne.s32.totalorder %s18_s16, %s1013_s17  ;;  %p1019_p2 = scmp.lt.s32.totalorder %s1013_s17, %s1013_s17 }
   0x7   :  { %p1020_p3 = por %p1019_p2, %p1018_p1 }
   0x9   :  { %p1021_p4 = pnand %p1020_p3, %p1014_p0 }
   0xb   :  { %1024 = shalt.err (!%p1021_p4)
}
   0xc   :  { %s1072_s18 = smov 128   ;;  %s1073_s19 = smov 8  }
   0xd   :  { %23 = dma.hbm_to_vmem [thread:$0]  %s1642_s0, 256, %s18_s16, [#allocation5], %s1072_s18, %s1072_s18, %s1073_s19  }
   0xe   :  { %s1074_s22 = smov [#allocation7]  }
   0xf   :  { %s29_s23 = sshll.u32 %s1074_s22, 4  ;;  %s30_s23 = int_to_ptr.vmem [resolvable:$true] %s29_s23 }
  0x10   :  { %s1033_s24 = scalar_lea.vmem %s30_s23, 2048  ;;  %p1038_p6 = scmp.lt.s32.totalorder %s30_s23, %s30_s23 }
  0x11   :  { %p1034_p5 = scmp.ne.s32.totalorder %s30_s23, %s1033_s24  ;;  %p1039_p7 = scmp.lt.s32.totalorder %s1033_s24, %s1033_s24 }
  0x13   :  { %p1040_p8 = por %p1039_p7, %p1038_p6 }
  0x15   :  { %p1041_p9 = pnand %p1040_p8, %p1034_p5 }
  0x17   :  { %1044 = shalt.err (!%p1041_p9)
}
  0x18   :  { %35 = dma.hbm_to_vmem [thread:$0]  %s1643_s1, 2048, %s30_s23, [#allocation8], %s1072_s18, %s1072_s18, %s1073_s19  }
  0x19   :  { %1065 = dma.done.wait [#allocation5], 256  }
  0x1a   :  { %1066 = vsyncadd [#allocation5], 4294967040 }
  0x1b   :  { %1067 = dma.done.wait [#allocation8], 2048  }
  0x1c   :  { %1068 = vsyncadd [#allocation8], 4294965248  ;;  %v72_v0 = vlaneseq  ;;  %v1116_v3 = vld [vmem:[%s1644_s2] sm:$0x1]  ;;  %v55_v6 = vld [vmem:[#allocation7] sm:$0xff]  ;;  %s1075_s28 = smov [#allocation9]  }
  0x1d   :  { %1659 = vst [vmem:[#allocation13_spill] sm:$0xff] %v1116_v3  ;;  %v1647_v4 = vmax.f32 %v1116_v3, 1e-05  ;;  %v56_v5 = vld [vmem:[#allocation7 + $0x8] sm:$0xff]  ;;  %v57_v10 = vld [vmem:[#allocation7 + $0x10] sm:$0xff]  ;;  %v58_v12 = vld [vmem:[#allocation7 + $0x18] sm:$0xff] }
  0x1e   :  { %v73_v1 = vshrl.u32 %v72_v0, 7  ;;  %v59_v14 = vld [vmem:[#allocation7 + $0x20] sm:$0xff]  ;;  %v60_v16 = vld [vmem:[#allocation7 + $0x28] sm:$0xff]  ;;  %v61_v18 = vld [vmem:[#allocation7 + $0x30] sm:$0xff]  ;;  %s642_s29 = sshll.u32 %s1075_s28, 4  ;;  %s643_s29 = int_to_ptr.vmem [resolvable:$true] %s642_s29 }
  0x1f   :  { %v62_v20 = vld [vmem:[#allocation7 + $0x38] sm:$0xff]  ;;  %v63_v22 = vld [vmem:[#allocation7 + $0x40] sm:$0xff]  ;;  %v64_v24 = vld [vmem:[#allocation7 + $0x48] sm:$0xff]  ;;  %s1045_s30 = scalar_lea.vmem %s643_s29, 256  ;;  %p1050_p11 = scmp.lt.s32.totalorder %s643_s29, %s643_s29 }
  0x20   :  { %v74_v2 = vsub.s32 0, %v73_v1  ;;  %v65_v26 = vld [vmem:[#allocation7 + $0x50] sm:$0xff]  ;;  %v66_v28 = vld [vmem:[#allocation7 + $0x58] sm:$0xff]  ;;  %v67_v30 = vld [vmem:[#allocation7 + $0x60] sm:$0xff]  ;;  %p1046_p10 = scmp.ne.s32.totalorder %s643_s29, %s1045_s30  ;;  %p1051_p12 = scmp.lt.s32.totalorder %s1045_s30, %s1045_s30 }
  0x21   :  { %v68_v32 = vld [vmem:[#allocation7 + $0x68] sm:$0xff]  ;;  %v69_v34 = vld [vmem:[#allocation7 + $0x70] sm:$0xff]  ;;  %v70_v36 = vld [vmem:[#allocation7 + $0x78] sm:$0xff] }
  0x22   :  { %v75_v7 = vrot.slane %v1647_v4, %v74_v2  ;;  %p1052_p13 = por %p1051_p12, %p1050_p11 }
  0x24   :  { %v1121_v8 = vmul.f32 %v75_v7, %v56_v5  ;;  %v1123_v9 = vmul.f32 %v75_v7, %v55_v6  ;;  %v1129_v11 = vmul.f32 %v75_v7, %v57_v10  ;;  %v1133_v13 = vmul.f32 %v75_v7, %v58_v12  ;;  %p1053_p0 = pnand %p1052_p13, %p1046_p10 }
  0x25   :  { %v1137_v15 = vmul.f32 %v75_v7, %v59_v14  ;;  %v1141_v17 = vmul.f32 %v75_v7, %v60_v16  ;;  %v1145_v19 = vmul.f32 %v75_v7, %v61_v18  ;;  %v1149_v21 = vmul.f32 %v75_v7, %v62_v20 }
  0x26   :  { %95 = vmin.xlane.f32.xlu1 %v1121_v8  ;;  %93 = vmin.xlane.f32.xlu0 %v1123_v9  ;;  %v1153_v23 = vmul.f32 %v75_v7, %v63_v22  ;;  %v1157_v25 = vmul.f32 %v75_v7, %v64_v24  ;;  %v1161_v27 = vmul.f32 %v75_v7, %v65_v26 }
  0x27   :  { %v1165_v29 = vmul.f32 %v75_v7, %v66_v28  ;;  %v1169_v31 = vmul.f32 %v75_v7, %v67_v30  ;;  %v1173_v33 = vmul.f32 %v75_v7, %v68_v32  ;;  %v1177_v35 = vmul.f32 %v75_v7, %v69_v34 }
  0x28   :  { %v1181_v37 = vmul.f32 %v75_v7, %v70_v36 }
  0x29   :  { %1660 = vst [vmem:[#allocation14_spill] sm:$0xff] %v1173_v33  ;;  %1661 = vst [vmem:[#allocation15_spill] sm:$0xff] %v1177_v35 }
  0x2a   :  { %143 = vmax.xlane.f32.xlu1 %v1121_v8  ;;  %141 = vmax.xlane.f32.xlu0 %v1123_v9  ;;  %1662 = vst [vmem:[#allocation16_spill] sm:$0xff] %v1181_v37 }
  0x2e   :  { %145 = vmax.xlane.f32.xlu1 %v1129_v11  ;;  %97 = vmin.xlane.f32.xlu0 %v1129_v11 }
  0x32   :  { %147 = vmax.xlane.f32.xlu1 %v1133_v13  ;;  %99 = vmin.xlane.f32.xlu0 %v1133_v13 }
  0x36   :  { %149 = vmax.xlane.f32.xlu1 %v1137_v15  ;;  %101 = vmin.xlane.f32.xlu0 %v1137_v15 }
  0x3a   :  { %151 = vmax.xlane.f32.xlu1 %v1141_v17  ;;  %103 = vmin.xlane.f32.xlu0 %v1141_v17 }
  0x3e   :  { %153 = vmax.xlane.f32.xlu1 %v1145_v19  ;;  %105 = vmin.xlane.f32.xlu0 %v1145_v19 }
  0x42   :  { %155 = vmax.xlane.f32.xlu1 %v1149_v21  ;;  %107 = vmin.xlane.f32.xlu0 %v1149_v21 }
  0x46   :  { %157 = vmax.xlane.f32.xlu1 %v1153_v23  ;;  %109 = vmin.xlane.f32.xlu0 %v1153_v23 }
  0x4a   :  { %159 = vmax.xlane.f32.xlu1 %v1157_v25  ;;  %111 = vmin.xlane.f32.xlu0 %v1157_v25 }
  0x4e   :  { %161 = vmax.xlane.f32.xlu1 %v1161_v27  ;;  %113 = vmin.xlane.f32.xlu0 %v1161_v27 }
  0x52   :  { %163 = vmax.xlane.f32.xlu1 %v1165_v29  ;;  %115 = vmin.xlane.f32.xlu0 %v1165_v29 }
  0x56   :  { %165 = vmax.xlane.f32.xlu1 %v1169_v31  ;;  %117 = vmin.xlane.f32.xlu0 %v1169_v31 }
  0x5a   :  { %167 = vmax.xlane.f32.xlu1 %v1173_v33  ;;  %119 = vmin.xlane.f32.xlu0 %v1173_v33 }
  0x5e   :  { %169 = vmax.xlane.f32.xlu1 %v1177_v35  ;;  %121 = vmin.xlane.f32.xlu0 %v1177_v35 }
  0x62   :  { %171 = vmax.xlane.f32.xlu1 %v1181_v37  ;;  %123 = vmin.xlane.f32.xlu0 %v1181_v37 }
  0xaf   :  { %v96_v38 = vpop.xlane.xlu1 %95  ;;  %v94_v39 = vpop.xlane.xlu0 %93 }
  0xb0   :  { %v126_v40 = vmin.f32 %v96_v38, 0.0  ;;  %v125_v41 = vmin.f32 %v94_v39, 0.0 }
  0xb2   :  { %vm190_vm0 = vcmp.eq.f32.partialorder %v126_v40, 0.0  ;;  %vm189_vm3 = vcmp.eq.f32.partialorder %v125_v41, 0.0 }
  0xb3   :  { %v144_v42 = vpop.xlane.xlu1 %143  ;;  %v142_v43 = vpop.xlane.xlu0 %141 }
  0xb4   :  { %v174_v44 = vmax.f32 %v144_v42, 0.0  ;;  %v173_v45 = vmax.f32 %v142_v43, 0.0 }
  0xb6   :  { %vm206_vm1 = vcmp.eq.f32.partialorder %v174_v44, 0.0  ;;  %vm205_vm2 = vcmp.eq.f32.partialorder %v173_v45, 0.0 }
  0xb7   :  { %vm222_vm4 = vmand %vm190_vm0, %vm206_vm1  ;;  %v146_v46 = vpop.xlane.xlu1 %145  ;;  %v98_v47 = vpop.xlane.xlu0 %97 }
  0xb8   :  { %v1185_v48 = vsel %vm222_vm4, -1.0, %v126_v40  ;;  %v254_v49 = vsel %vm222_vm4, 1.0, %v174_v44  ;;  %vm221_vm5 = vmand %vm189_vm3, %vm205_vm2  ;;  %v175_v50 = vmax.f32 %v146_v46, 0.0  ;;  %v127_v51 = vmin.f32 %v98_v47, 0.0 }
  0xb9   :  { %v270_v52 = vsub.f32 %v254_v49, %v1185_v48  ;;  %v1188_v53 = vsel %vm221_vm5, -1.0, %v125_v41  ;;  %v253_v54 = vsel %vm221_vm5, 1.0, %v173_v45 }
  0xba   :  { %v269_v55 = vsub.f32 %v253_v54, %v1188_v53  ;;  %vm207_vm6 = vcmp.eq.f32.partialorder %v175_v50, 0.0  ;;  %vm191_vm7 = vcmp.eq.f32.partialorder %v127_v51, 0.0  ;;  %v302_v44 = vsub.f32 0.0, %v1188_v53 }
  0xbb   :  { %v1191_v56 = vmul.f32 0.06666667, %v270_v52  ;;  %vm223_vm8 = vmand %vm191_vm7, %vm207_vm6  ;;  %v148_v57 = vpop.xlane.xlu1 %147  ;;  %v100_v58 = vpop.xlane.xlu0 %99 }
  0xbc   :  { %v1193_v59 = vsel %vm223_vm8, -1.0, %v127_v51  ;;  %v255_v60 = vsel %vm223_vm8, 1.0, %v175_v50  ;;  %v176_v61 = vmax.f32 %v148_v57, 0.0  ;;  %v128_v62 = vmin.f32 %v100_v58, 0.0 }
  0xbd   :  { %v271_v63 = vsub.f32 %v255_v60, %v1193_v59  ;;  %v1196_v0 = vmul.f32 0.06666667, %v269_v55  ;;  %971 = vrcp.f32 %v1191_v56  ;;  %v303_v55 = vsub.f32 0.0, %v1185_v48 }
  0xbe   :  { %vm208_vm9 = vcmp.eq.f32.partialorder %v176_v61, 0.0  ;;  %vm192_vm10 = vcmp.eq.f32.partialorder %v128_v62, 0.0  ;;  %v304_v57 = vsub.f32 0.0, %v1193_v59 }
  0xbf   :  { %v1199_v1 = vmul.f32 0.06666667, %v271_v63  ;;  %vm224_vm11 = vmand %vm192_vm10, %vm208_vm9  ;;  %v150_v2 = vpop.xlane.xlu1 %149  ;;  %v102_v5 = vpop.xlane.xlu0 %101  ;;  %973 = vrcp.f32 %v1196_v0 }
  0xc0   :  { %v1202_v6 = vsel %vm224_vm11, -1.0, %v128_v62  ;;  %v256_v7 = vsel %vm224_vm11, 1.0, %v176_v61  ;;  %v177_v10 = vmax.f32 %v150_v2, 0.0  ;;  %v129_v12 = vmin.f32 %v102_v5, 0.0 }
  0xc1   :  { %975 = vrcp.f32 %v1199_v1  ;;  %v272_v14 = vsub.f32 %v256_v7, %v1202_v6  ;;  %v305_v62 = vsub.f32 0.0, %v1202_v6 }
  0xc2   :  { %vm209_vm12 = vcmp.eq.f32.partialorder %v177_v10, 0.0  ;;  %vm193_vm13 = vcmp.eq.f32.partialorder %v129_v12, 0.0 }
  0xc3   :  { %v1206_v16 = vmul.f32 0.06666667, %v272_v14  ;;  %vm225_vm14 = vmand %vm193_vm13, %vm209_vm12  ;;  %v152_v18 = vpop.xlane.xlu1 %151  ;;  %v104_v20 = vpop.xlane.xlu0 %103 }
  0xc4   :  { %v1208_v22 = vsel %vm225_vm14, -1.0, %v129_v12  ;;  %v257_v24 = vsel %vm225_vm14, 1.0, %v177_v10  ;;  %v178_v26 = vmax.f32 %v152_v18, 0.0  ;;  %v130_v28 = vmin.f32 %v104_v20, 0.0 }
  0xc5   :  { %977 = vrcp.f32 %v1206_v16  ;;  %v273_v30 = vsub.f32 %v257_v24, %v1208_v22  ;;  %v306_v63 = vsub.f32 0.0, %v1208_v22 }
  0xc6   :  { %vm210_vm15 = vcmp.eq.f32.partialorder %v178_v26, 0.0  ;;  %vm194_vm0 = vcmp.eq.f32.partialorder %v130_v28, 0.0 }
  0xc7   :  { %v1212_v32 = vmul.f32 0.06666667, %v273_v30  ;;  %vm226_vm1 = vmand %vm194_vm0, %vm210_vm15  ;;  %v154_v34 = vpop.xlane.xlu1 %153  ;;  %v106_v36 = vpop.xlane.xlu0 %105 }
  0xc8   :  { %v1214_v38 = vsel %vm226_vm1, -1.0, %v130_v28  ;;  %v258_v39 = vsel %vm226_vm1, 1.0, %v178_v26  ;;  %v179_v40 = vmax.f32 %v154_v34, 0.0  ;;  %v131_v41 = vmin.f32 %v106_v36, 0.0 }
  0xc9   :  { %v274_v42 = vsub.f32 %v258_v39, %v1214_v38  ;;  %979 = vrcp.f32 %v1212_v32  ;;  %v307_v18 = vsub.f32 0.0, %v1214_v38 }
  0xca   :  { %vm211_vm2 = vcmp.eq.f32.partialorder %v179_v40, 0.0  ;;  %vm195_vm3 = vcmp.eq.f32.partialorder %v131_v41, 0.0  ;;  %v972_v43 = vpop.eup %971 }
  0xcb   :  { %v1219_v45 = vmul.f32 0.06666667, %v274_v42  ;;  %vm227_vm4 = vmand %vm195_vm3, %vm211_vm2  ;;  %v156_v46 = vpop.xlane.xlu1 %155  ;;  %v108_v47 = vpop.xlane.xlu0 %107  ;;  %v1231_v61 = vmul.f32 %v972_v43, %v303_v55  ;;  %v1249_v24 = vmul.f32 %v972_v43, %v1121_v8 }
  0xcc   :  { %v974_v49 = vpop.eup %973  ;;  %v1221_v50 = vsel %vm227_vm4, -1.0, %v131_v41  ;;  %v259_v51 = vsel %vm227_vm4, 1.0, %v179_v40  ;;  %v180_v52 = vmax.f32 %v156_v46, 0.0  ;;  %v132_v54 = vmin.f32 %v108_v47, 0.0 }
  0xcd   :  { %v275_v58 = vsub.f32 %v259_v51, %v1221_v50  ;;  %981 = vrcp.f32 %v1219_v45  ;;  %v1229_v60 = vmul.f32 %v974_v49, %v302_v44  ;;  %v1255_v36 = vmul.f32 %v974_v49, %v1123_v9 }
  0xce   :  { %v1226_v53 = vpop.eup %975  ;;  %vm212_vm5 = vcmp.eq.f32.partialorder %v180_v52, 0.0  ;;  %vm196_vm6 = vcmp.eq.f32.partialorder %v132_v54, 0.0  ;;  %v846_v35 = vand.u32 2147483647, %v1249_v24 }
  0xcf   :  { %v1235_v2 = vmul.f32 0.06666667, %v275_v58  ;;  %vm228_vm7 = vmand %vm196_vm6, %vm212_vm5  ;;  %v158_v48 = vpop.xlane.xlu1 %157  ;;  %v110_v59 = vpop.xlane.xlu0 %109  ;;  %v1240_v14 = vmul.f32 %v1226_v53, %v304_v57  ;;  %v712_v22 = vcvt.f32.s32 %v1229_v60  ;;  %v710_v47 = vand.u32 2147483647, %v1229_v60 }
  0xd0   :  { %v1237_v5 = vsel %vm228_vm7, -1.0, %v132_v54  ;;  %v260_v7 = vsel %vm228_vm7, 1.0, %v180_v52  ;;  %v181_v10 = vmax.f32 %v158_v48, 0.0  ;;  %v133_v12 = vmin.f32 %v110_v59, 0.0 }
  0xd1   :  { %983 = vrcp.f32 %v1235_v2  ;;  %v276_v6 = vsub.f32 %v260_v7, %v1237_v5  ;;  %v713_v9 = vcvt.s32.f32 %v712_v22  ;;  %v715_v55 = vand.u32 2147483648, %v1229_v60 }
  0xd2   :  { %v1245_v20 = vpop.eup %977  ;;  %vm213_vm8 = vcmp.eq.f32.partialorder %v181_v10, 0.0  ;;  %vm197_vm9 = vcmp.eq.f32.partialorder %v133_v12, 0.0  ;;  %v840_v57 = vcvt.f32.s32 %v1255_v36  ;;  %v838_v22 = vand.u32 2147483647, %v1255_v36 }
  0xd3   :  { %v1252_v28 = vmul.f32 0.06666667, %v276_v6  ;;  %vm229_vm10 = vmand %vm197_vm9, %vm213_vm8  ;;  %v160_v30 = vpop.xlane.xlu1 %159  ;;  %v112_v34 = vpop.xlane.xlu0 %111  ;;  %v1262_v43 = vmul.f32 %v1245_v20, %v305_v62  ;;  %vm1280_vm0 = vcmp.lt.f32.partialorder %v710_v47, 8388608.0 }
  0xd4   :  { %v1258_v40 = vsel %vm229_vm10, -1.0, %v133_v12  ;;  %v261_v41 = vsel %vm229_vm10, 1.0, %v181_v10  ;;  %v182_v42 = vmax.f32 %v160_v30, 0.0  ;;  %v134_v44 = vmin.f32 %v112_v34, 0.0 }
  0xd5   :  { %v277_v46 = vsub.f32 %v261_v41, %v1258_v40  ;;  %985 = vrcp.f32 %v1252_v28  ;;  %v714_v34 = vand.u32 2147483647, %v713_v9  ;;  %v841_v41 = vcvt.s32.f32 %v840_v57 }
  0xd6   :  { %vm214_vm11 = vcmp.eq.f32.partialorder %v182_v42, 0.0  ;;  %vm198_vm12 = vcmp.eq.f32.partialorder %v134_v44, 0.0  ;;  %v1272_v58 = vpop.eup %979  ;;  %vm1297_vm2 = vcmp.lt.f32.partialorder %v838_v22, 8388608.0 }
  0xd7   :  { %v1268_v49 = vmul.f32 0.06666667, %v277_v46  ;;  %vm230_vm13 = vmand %vm198_vm12, %vm214_vm11  ;;  %v162_v52 = vpop.xlane.xlu1 %161  ;;  %v114_v54 = vpop.xlane.xlu0 %113  ;;  %v716_v12 = vor.u32 %v715_v55, %v714_v34 }
  0xd8   :  { %v1274_v62 = vsel %vm230_vm13, -1.0, %v134_v44  ;;  %v262_v48 = vsel %vm230_vm13, 1.0, %v182_v42  ;;  %v183_v59 = vmax.f32 %v162_v52, 0.0  ;;  %v135_v7 = vmin.f32 %v114_v54, 0.0 }
  0xd9   :  { %v278_v6 = vsub.f32 %v262_v48, %v1274_v62  ;;  %v1287_v42 = vmul.f32 %v1272_v58, %v306_v63  ;;  %987 = vrcp.f32 %v1268_v49  ;;  %v720_v48 = vcvt.f32.s32 %v1231_v61 }
  0xda   :  { %vm215_vm14 = vcmp.eq.f32.partialorder %v183_v59, 0.0  ;;  %vm199_vm15 = vcmp.eq.f32.partialorder %v135_v7, 0.0  ;;  %v1284_v44 = vpop.eup %981  ;;  %vm847_vm13 = vcmp.lt.f32.partialorder %v846_v35, 8388608.0 }
  0xdb   :  { %v1290_v46 = vmul.f32 0.06666667, %v278_v6  ;;  %vm231_vm1 = vmand %vm199_vm15, %vm215_vm14  ;;  %v164_v52 = vpop.xlane.xlu1 %163  ;;  %v116_v54 = vpop.xlane.xlu0 %115  ;;  %v843_v6 = vand.u32 2147483648, %v1255_v36  ;;  %v721_v51 = vcvt.s32.f32 %v720_v48 }
  0xdc   :  { %v1293_v47 = vsel %vm231_vm1, -1.0, %v135_v7  ;;  %v263_v4 = vsel %vm231_vm1, 1.0, %v183_v59  ;;  %v184_v10 = vmax.f32 %v164_v52, 0.0  ;;  %v136_v9 = vmin.f32 %v116_v54, 0.0 }
  0xdd   :  { %989 = vrcp.f32 %v1290_v46  ;;  %v279_v57 = vsub.f32 %v263_v4, %v1293_v47  ;;  %v1307_v7 = vmul.f32 %v1284_v44, %v307_v18  ;;  %v842_v59 = vand.u32 2147483647, %v841_v41 }
  0xde   :  { %v1302_v8 = vpop.eup %983  ;;  %vm216_vm3 = vcmp.eq.f32.partialorder %v184_v10, 0.0  ;;  %vm200_vm4 = vcmp.eq.f32.partialorder %v136_v9, 0.0  ;;  %v1668_v18 = vsub.f32 0.0, %v1221_v50  ;;  %v311_v41 = vsub.f32 0.0, %v1274_v62 }
  0xdf   :  { %v1310_v54 = vmul.f32 0.06666667, %v279_v57  ;;  %vm232_vm5 = vmand %vm200_vm4, %vm216_vm3  ;;  %v166_v4 = vpop.xlane.xlu1 %165  ;;  %v118_v22 = vpop.xlane.xlu0 %117  ;;  %v844_v55 = vor.u32 %v843_v6, %v842_v59  ;;  %v717_v62 = vsel %vm1280_vm0, %v716_v12, %v1229_v60  ;;  %v312_v30 = vsub.f32 0.0, %v1293_v47 }
  0xe0   :  { %v1312_v39 = vsel %vm232_vm5, -1.0, %v136_v9  ;;  %v264_v26 = vsel %vm232_vm5, 1.0, %v184_v10  ;;  %v185_v3 = vmax.f32 %v166_v4, 0.0  ;;  %v137_v38 = vmin.f32 %v118_v22, 0.0 }
  0xe1   :  { %1667 = vst [vmem:[#allocation17_spill] sm:$0xff] %v1310_v54  ;;  %v1317_v37 = vmul.f32 %v1302_v8, %v1668_v18  ;;  %991 = vrcp.f32 %v1310_v54  ;;  %v280_v57 = vsub.f32 %v264_v26, %v1312_v39  ;;  %v1669_v10 = vand.u32 2147483647, %v1231_v61 }
  0xe2   :  { %vm217_vm6 = vcmp.eq.f32.partialorder %v185_v3, 0.0  ;;  %vm201_vm7 = vcmp.eq.f32.partialorder %v137_v38, 0.0  ;;  %v722_v9 = vand.u32 2147483647, %v721_v51  ;;  %v848_v4 = vcvt.f32.s32 %v1249_v24  ;;  %v1335_v22 = vpop.eup %985 }
  0xe3   :  { %vm1325_vm8 = vcmp.lt.f32.partialorder %v1669_v10, 8388608.0  ;;  %v1329_v50 = vmul.f32 0.06666667, %v280_v57  ;;  %vm233_vm9 = vmand %vm201_vm7, %vm217_vm6  ;;  %v168_v48 = vpop.xlane.xlu1 %167  ;;  %v120_v26 = vpop.xlane.xlu0 %119  ;;  %v845_v18 = vsel %vm1297_vm2, %v844_v55, %v1255_v36  ;;  %v723_v51 = vand.u32 2147483648, %v1231_v61 }
  0xe4   :  { %v1337_v6 = vsel %vm233_vm9, -1.0, %v137_v38  ;;  %v265_v59 = vsel %vm233_vm9, 1.0, %v185_v3  ;;  %v186_v57 = vmax.f32 %v168_v48, 0.0  ;;  %v398_v12 = vadd.f32 %v845_v18, %v717_v62 }
  0xe5   :  { %1672 = vst [vmem:[#allocation18_spill] sm:$0xff] %v1329_v50  ;;  %v281_v60 = vsub.f32 %v265_v59, %v1337_v6  ;;  %993 = vrcp.f32 %v1329_v50  ;;  %v138_v3 = vmin.f32 %v120_v26, 0.0  ;;  %v724_v55 = vor.u32 %v723_v51, %v722_v9 }
  0xe6   :  { %vm1347_vm10 = vcmp.eq.f32.partialorder %v186_v57, 0.0  ;;  %v849_v48 = vcvt.s32.f32 %v848_v4  ;;  %v1354_v52 = vpop.eup %987  ;;  %v1676_v59 = vsub.f32 0.0, %v1237_v5  ;;  %v414_v18 = vmax.f32 %v398_v12, 0.0 }
  0xe7   :  { %v1352_v36 = vmul.f32 0.06666667, %v281_v60  ;;  %v170_v10 = vpop.xlane.xlu1 %169  ;;  %v122_v47 = vpop.xlane.xlu0 %121  ;;  %vm202_vm11 = vcmp.eq.f32.partialorder %v138_v3, 0.0  ;;  %v851_v9 = vand.u32 2147483648, %v1249_v24  ;;  %v1677_v12 = vsub.f32 0.0, %v1258_v40 }
  0xe8   :  { %v1359_v50 = vmul.f32 %v1335_v22, %v1676_v59  ;;  %vm234_vm12 = vmand %vm202_vm11, %vm1347_vm10  ;;  %v850_v26 = vand.u32 2147483647, %v849_v48  ;;  %v187_v4 = vmax.f32 %v170_v10, 0.0  ;;  %v430_v51 = vmin.f32 %v414_v18, 15.0 }
  0xe9   :  { %1675 = vst [vmem:[#allocation19_spill] sm:$0xff] %v1352_v36  ;;  %995 = vrcp.f32 %v1352_v36  ;;  %v1368_v5 = vsel %vm234_vm12, -1.0, %v138_v3  ;;  %v266_v59 = vsel %vm234_vm12, 1.0, %v186_v57  ;;  %v139_v63 = vmin.f32 %v122_v47, 0.0 }
  0xea   :  { %v1366_v60 = vpop.eup %989  ;;  %v1373_v54 = vmul.f32 %v1354_v52, %v1677_v12  ;;  %v282_v36 = vsub.f32 %v266_v59, %v1368_v5  ;;  %v725_v38 = vsel %vm1325_vm8, %v724_v55, %v1231_v61  ;;  %v852_v48 = vor.u32 %v851_v9, %v850_v26 }
  0xeb   :  { %v446_v10 = vsub.f32 %v430_v51, %v717_v62  ;;  %vm219_vm14 = vcmp.eq.f32.partialorder %v187_v4, 0.0  ;;  %vm203_vm15 = vcmp.eq.f32.partialorder %v139_v63, 0.0  ;;  %v1380_v3 = vmul.f32 %v1366_v60, %v311_v41  ;;  %v172_v55 = vpop.xlane.xlu1 %171  ;;  %v124_v26 = vpop.xlane.xlu0 %123 }
  0xec   :  { %v1382_v57 = vmul.f32 0.06666667, %v282_v36  ;;  %v853_v40 = vsel %vm847_vm13, %v852_v48, %v1249_v24  ;;  %vm235_vm0 = vmand %vm203_vm15, %vm219_vm14  ;;  %v1679_v47 = vcvt.f32.s32 %v1240_v14  ;;  %v726_v24 = vand.u32 2147483647, %v1240_v14 }
  0xed   :  { %v462_v61 = vmul.f32 %v446_v10, %v1196_v0  ;;  %v399_v34 = vadd.f32 %v853_v40, %v725_v38  ;;  %v1390_v62 = vsel %vm235_vm0, -1.0, %v139_v63  ;;  %v267_v35 = vsel %vm235_vm0, 1.0, %v187_v4 }
  0xee   :  { %1678 = vst [vmem:[#allocation20_spill] sm:$0xff] %v1382_v57  ;;  %v729_v18 = vcvt.s32.f32 %v1679_v47  ;;  %v1387_v59 = vpop.eup %991  ;;  %997 = vrcp.f32 %v1382_v57  ;;  %v283_v36 = vsub.f32 %v267_v35, %v1390_v62  ;;  %v314_v0 = vsub.f32 0.0, %v1337_v6 }
  0xef   :  { %v1398_v51 = vmul.f32 %v1387_v59, %v312_v30  ;;  %478 = vxpose.xlu0.b32.start [1/16] %v462_v61, 128  ;;  %v415_v63 = vmax.f32 %v399_v34, 0.0  ;;  %v368_v48 = vmul.f32 %v1226_v53, %v1129_v11  ;;  %v188_v10 = vmax.f32 %v172_v55, 0.0 }
  0xf0   :  { %v1401_v4 = vmul.f32 0.06666667, %v283_v36  ;;  %v730_v12 = vand.u32 2147483647, %v729_v18  ;;  %v315_v47 = vsub.f32 0.0, %v1368_v5  ;;  %v140_v9 = vmin.f32 %v124_v26, 0.0 }
  0xf1   :  { %v431_v35 = vmin.f32 %v415_v63, 15.0  ;;  %vm1410_vm1 = vcmp.lt.f32.partialorder %v726_v24, 8388608.0  ;;  %v731_v18 = vand.u32 2147483648, %v1240_v14  ;;  %v856_v61 = vcvt.f32.s32 %v368_v48 }
  0xf2   :  { %1680 = vst [vmem:[#allocation21_spill] sm:$0xff] %v1401_v4  ;;  %v1407_v41 = vpop.eup %993  ;;  %999 = vrcp.f32 %v1401_v4  ;;  %vm220_vm2 = vcmp.eq.f32.partialorder %v188_v10, 0.0  ;;  %vm204_vm3 = vcmp.eq.f32.partialorder %v140_v9, 0.0  ;;  %v734_v55 = vand.u32 2147483647, %v1262_v43 }
  0xf3   :  { %v447_v53 = vsub.f32 %v431_v35, %v725_v38  ;;  %v732_v5 = vor.u32 %v731_v18, %v730_v12  ;;  %v857_v34 = vcvt.s32.f32 %v856_v61  ;;  %v1683_v24 = vsub.f32 0.0, %v1312_v39  ;;  %vm236_vm4 = vmand %vm204_vm3, %vm220_vm2 }
  0xf4   :  { %v854_v40 = vand.u32 2147483647, %v368_v48  ;;  %v1684_v38 = vcvt.f32.s32 %v1262_v43  ;;  %v859_v12 = vand.u32 2147483648, %v368_v48  ;;  %v1428_v18 = vsel %vm236_vm4, -1.0, %v140_v9 }
  0xf5   :  { %v1423_v26 = vmul.f32 %v1407_v41, %v1683_v24  ;;  %v463_v63 = vmul.f32 %v447_v53, %v1191_v56  ;;  %v858_v11 = vand.u32 2147483647, %v857_v34  ;;  %v268_v61 = vsel %vm236_vm4, 1.0, %v188_v10 }
  0xf6   :  { %v1418_v36 = vpop.eup %995  ;;  %v737_v35 = vcvt.s32.f32 %v1684_v38  ;;  %v284_v39 = vsub.f32 %v268_v61, %v1428_v18  ;;  %v369_v56 = vmul.f32 %v1245_v20, %v1133_v13  ;;  %v733_v53 = vsel %vm1410_vm1, %v732_v5, %v1240_v14 }
  0xf7   :  { %v1431_v30 = vmul.f32 %v1418_v36, %v314_v0  ;;  %479 = vxpose.xlu0.b32.cont [2/16] %v463_v63, 128  ;;  %v860_v38 = vor.u32 %v859_v12, %v858_v11  ;;  %v739_v34 = vand.u32 2147483648, %v1262_v43  ;;  %v1685_v9 = vcvt.f32.s32 %v1287_v42 }
  0xf8   :  { %v738_v24 = vand.u32 2147483647, %v737_v35  ;;  %vm855_vm5 = vcmp.lt.f32.partialorder %v854_v40, 8388608.0  ;;  %v1442_v0 = vmul.f32 0.06666667, %v284_v39  ;;  %v864_v63 = vcvt.f32.s32 %v369_v56 }
  0xf9   :  { %v745_v10 = vcvt.s32.f32 %v1685_v9  ;;  %v742_v61 = vand.u32 2147483647, %v1287_v42  ;;  %v861_v4 = vsel %vm855_vm5, %v860_v38, %v368_v48  ;;  %vm1446_vm6 = vcmp.lt.f32.partialorder %v734_v55, 8388608.0 }
  0xfa   :  { %1686 = vst [vmem:[#allocation22_spill] sm:$0xff] %v1442_v0  ;;  %v740_v14 = vor.u32 %v739_v34, %v738_v24  ;;  %v400_v11 = vadd.f32 %v861_v4, %v733_v53  ;;  %v862_v5 = vand.u32 2147483647, %v369_v56  ;;  %1001 = vrcp.f32 %v1442_v0 }
  0xfb   :  { %v1450_v20 = vpop.eup %997  ;;  %v865_v12 = vcvt.s32.f32 %v864_v63  ;;  %v746_v39 = vand.u32 2147483647, %v745_v10  ;;  %v370_v48 = vmul.f32 %v1272_v58, %v1137_v15  ;;  %v867_v38 = vand.u32 2147483648, %v369_v56 }
  0xfc   :  { %1689 = vst [vmem:[#allocation23_spill] sm:$0xff] %v1450_v20  ;;  %v416_v55 = vmax.f32 %v400_v11, 0.0  ;;  %vm1457_vm7 = vcmp.lt.f32.partialorder %v742_v61, 8388608.0  ;;  %v1692_v24 = vcvt.f32.s32 %v1307_v7  ;;  %v1464_v4 = vmul.f32 %v1450_v20, %v315_v47 }
  0xfd   :  { %v741_v63 = vsel %vm1446_vm6, %v740_v14, %v1262_v43  ;;  %v866_v10 = vand.u32 2147483647, %v865_v12  ;;  %v747_v6 = vand.u32 2147483648, %v1287_v42  ;;  %vm1470_vm8 = vcmp.lt.f32.partialorder %v862_v5, 8388608.0 }
  0xfe   :  { %v753_v34 = vcvt.s32.f32 %v1692_v24  ;;  %v432_v15 = vmin.f32 %v416_v55, 15.0  ;;  %v872_v61 = vcvt.f32.s32 %v370_v48  ;;  %v750_v11 = vand.u32 2147483647, %v1307_v7 }
  0xff   :  { %v1475_v35 = vpop.eup %999  ;;  %v868_v24 = vor.u32 %v867_v38, %v866_v10  ;;  %v748_v47 = vor.u32 %v747_v6, %v746_v39  ;;  %v870_v40 = vand.u32 2147483647, %v370_v48  ;;  %v755_v0 = vand.u32 2147483648, %v1307_v7 }
 0x100   :  { %v448_v13 = vsub.f32 %v432_v15, %v733_v53  ;;  %v873_v43 = vcvt.s32.f32 %v872_v61  ;;  %v754_v14 = vand.u32 2147483647, %v753_v34  ;;  %v371_v12 = vmul.f32 %v1284_v44, %v1141_v17 }
 0x101   :  { %v816_v5 = vcvt.f32.s32 %v1464_v4  ;;  %v869_v55 = vsel %vm1470_vm8, %v868_v24, %v369_v56  ;;  %v875_v57 = vand.u32 2147483648, %v370_v48  ;;  %v1695_v20 = vcvt.f32.s32 %v1317_v37 }
 0x102   :  { %v1696_v6 = vsub.f32 0.0, %v1390_v62  ;;  %v464_v53 = vmul.f32 %v448_v13, %v1199_v1  ;;  %v401_v38 = vadd.f32 %v869_v55, %v741_v63  ;;  %v874_v34 = vand.u32 2147483647, %v873_v43 }
 0x103   :  { %v761_v33 = vcvt.s32.f32 %v1695_v20  ;;  %v749_v17 = vsel %vm1457_vm7, %v748_v47, %v1287_v42  ;;  %vm1494_vm9 = vcmp.lt.f32.partialorder %v870_v40, 8388608.0  ;;  %vm1498_vm10 = vcmp.lt.f32.partialorder %v750_v11, 8388608.0 }
 0x104   :  { %v1488_v39 = vmul.f32 %v1475_v35, %v1696_v6  ;;  %v880_v62 = vcvt.f32.s32 %v371_v12  ;;  %480 = vxpose.xlu0.b32.cont [3/16] %v464_v53, 128  ;;  %v417_v20 = vmax.f32 %v401_v38, 0.0  ;;  %v876_v10 = vor.u32 %v875_v57, %v874_v34 }
 0x105   :  { %v756_v15 = vor.u32 %v755_v0, %v754_v14  ;;  %v758_v1 = vand.u32 2147483647, %v1317_v37  ;;  %v878_v58 = vand.u32 2147483647, %v371_v12  ;;  %v762_v24 = vand.u32 2147483647, %v761_v33 }
 0x106   :  { %v881_v61 = vcvt.s32.f32 %v880_v62  ;;  %v372_v42 = vmul.f32 %v1302_v8, %v1145_v19  ;;  %v824_v40 = vcvt.f32.s32 %v1488_v39  ;;  %v433_v9 = vmin.f32 %v417_v20, 15.0 }
 0x107   :  { %v877_v11 = vsel %vm1494_vm9, %v876_v10, %v370_v48  ;;  %v883_v47 = vand.u32 2147483648, %v371_v12  ;;  %v763_v57 = vand.u32 2147483648, %v1317_v37  ;;  %v1701_v0 = vcvt.f32.s32 %v1359_v50  ;;  %v1511_v55 = vpop.eup %1001 }
 0x108   :  { %v402_v13 = vadd.f32 %v877_v11, %v749_v17  ;;  %v882_v43 = vand.u32 2147483647, %v881_v61  ;;  %v449_v33 = vsub.f32 %v433_v9, %v741_v63  ;;  %v757_v19 = vsel %vm1498_vm10, %v756_v15, %v1307_v7 }
 0x109   :  { %v769_v14 = vcvt.s32.f32 %v1701_v0  ;;  %vm1516_vm11 = vcmp.lt.f32.partialorder %v758_v1, 8388608.0  ;;  %v888_v48 = vcvt.f32.s32 %v372_v42  ;;  %vm879_vm12 = vcmp.lt.f32.partialorder %v878_v58, 8388608.0 }
 0x10a   :  { %v418_v6 = vmax.f32 %v402_v13, 0.0  ;;  %v884_v53 = vor.u32 %v883_v47, %v882_v43  ;;  %v764_v38 = vor.u32 %v763_v57, %v762_v24  ;;  %v465_v34 = vmul.f32 %v449_v33, %v1206_v16 }
 0x10b   :  { %v886_v44 = vand.u32 2147483647, %v372_v42  ;;  %v889_v62 = vcvt.s32.f32 %v888_v48  ;;  %v766_v20 = vand.u32 2147483647, %v1359_v50  ;;  %v1704_v63 = vsub.f32 0.0, %v1428_v18 }
 0x10c   :  { %v434_v7 = vmin.f32 %v418_v6, 15.0  ;;  %v885_v10 = vsel %vm879_vm12, %v884_v53, %v371_v12  ;;  %v770_v15 = vand.u32 2147483647, %v769_v14  ;;  %481 = vxpose.xlu0.b32.cont [4/16] %v465_v34, 128  ;;  %v891_v58 = vand.u32 2147483648, %v372_v42 }
 0x10d   :  { %v1525_v56 = vmul.f32 %v1511_v55, %v1704_v63  ;;  %v403_v1 = vadd.f32 %v885_v10, %v757_v19  ;;  %v890_v61 = vand.u32 2147483647, %v889_v62  ;;  %v373_v24 = vmul.f32 %v1335_v22, %v1149_v21 }
 0x10e   :  { %v450_v16 = vsub.f32 %v434_v7, %v749_v17  ;;  %v765_v9 = vsel %vm1516_vm11, %v764_v38, %v1317_v37  ;;  %v771_v18 = vand.u32 2147483648, %v1359_v50  ;;  %v1705_v11 = vcvt.f32.s32 %v1373_v54 }
 0x10f   :  { %v419_v13 = vmax.f32 %v403_v1, 0.0  ;;  %vm887_vm13 = vcmp.lt.f32.partialorder %v886_v44, 8388608.0  ;;  %v892_v12 = vor.u32 %v891_v58, %v890_v61  ;;  %v896_v43 = vcvt.f32.s32 %v373_v24 }
 0x110   :  { %v777_v47 = vcvt.s32.f32 %v1705_v11  ;;  %v466_v57 = vmul.f32 %v450_v16, %v1212_v32  ;;  %vm1536_vm14 = vcmp.lt.f32.partialorder %v766_v20, 8388608.0  ;;  %v772_v21 = vor.u32 %v771_v18, %v770_v15 }
 0x111   :  { %v774_v22 = vand.u32 2147483647, %v1373_v54  ;;  %v435_v17 = vmin.f32 %v419_v13, 15.0  ;;  %v893_v37 = vsel %vm887_vm13, %v892_v12, %v372_v42  ;;  %v897_v14 = vcvt.s32.f32 %v896_v43 }
 0x112   :  { %v779_v33 = vand.u32 2147483648, %v1373_v54  ;;  %482 = vxpose.xlu0.b32.cont [5/16] %v466_v57, 128  ;;  %v404_v8 = vadd.f32 %v893_v37, %v765_v9  ;;  %v894_v48 = vand.u32 2147483647, %v373_v24  ;;  %v778_v6 = vand.u32 2147483647, %v777_v47 }
 0x113   :  { %v374_v53 = vmul.f32 %v1354_v52, %v1153_v23  ;;  %v451_v32 = vsub.f32 %v435_v17, %v757_v19  ;;  %v898_v38 = vand.u32 2147483647, %v897_v14  ;;  %v899_v34 = vand.u32 2147483648, %v373_v24 }
 0x114   :  { %v1708_v44 = vcvt.f32.s32 %v1380_v3  ;;  %v420_v20 = vmax.f32 %v404_v8, 0.0  ;;  %v773_v42 = vsel %vm1536_vm14, %v772_v21, %v1359_v50  ;;  %vm1549_vm15 = vcmp.lt.f32.partialorder %v774_v22, 8388608.0 }
 0x115   :  { %v904_v7 = vcvt.f32.s32 %v374_v53  ;;  %v467_v10 = vmul.f32 %v451_v32, %v1219_v45  ;;  %v900_v15 = vor.u32 %v899_v34, %v898_v38  ;;  %v780_v23 = vor.u32 %v779_v33, %v778_v6 }
 0x116   :  { %v785_v62 = vcvt.s32.f32 %v1708_v44  ;;  %v782_v52 = vand.u32 2147483647, %v1380_v3  ;;  %v436_v19 = vmin.f32 %v420_v20, 15.0  ;;  %vm895_vm0 = vcmp.lt.f32.partialorder %v894_v48, 8388608.0  ;;  %v1720_v44 = vld [vmem:[#allocation14_spill] sm:$0xff] }
 0x117   :  { %v902_v1 = vand.u32 2147483647, %v374_v53  ;;  %v905_v61 = vcvt.s32.f32 %v904_v7  ;;  %483 = vxpose.xlu0.b32.cont [6/16] %v467_v10, 128  ;;  %v901_v58 = vsel %vm895_vm0, %v900_v15, %v373_v24  ;;  %v907_v16 = vand.u32 2147483648, %v374_v53 }
 0x118   :  { %v786_v18 = vand.u32 2147483647, %v785_v62  ;;  %v375_v50 = vmul.f32 %v1366_v60, %v1157_v25  ;;  %v452_v11 = vsub.f32 %v436_v19, %v765_v9  ;;  %v405_v47 = vadd.f32 %v901_v58, %v773_v42 }
 0x119   :  { %v906_v13 = vand.u32 2147483647, %v905_v61  ;;  %v1711_v45 = vcvt.f32.s32 %v1398_v51  ;;  %v781_v43 = vsel %vm1549_vm15, %v780_v23, %v1373_v54  ;;  %vm1562_vm1 = vcmp.lt.f32.partialorder %v782_v52, 8388608.0 }
 0x11a   :  { %v787_v24 = vand.u32 2147483648, %v1380_v3  ;;  %v912_v0 = vcvt.f32.s32 %v375_v50  ;;  %v468_v21 = vmul.f32 %v452_v11, %v1235_v2  ;;  %v421_v25 = vmax.f32 %v405_v47, 0.0 }
 0x11b   :  { %v793_v12 = vcvt.s32.f32 %v1711_v45  ;;  %v908_v60 = vor.u32 %v907_v16, %v906_v13  ;;  %v790_v9 = vand.u32 2147483647, %v1398_v51  ;;  %vm903_vm2 = vcmp.lt.f32.partialorder %v902_v1, 8388608.0 }
 0x11c   :  { %v788_v22 = vor.u32 %v787_v24, %v786_v18  ;;  %v910_v17 = vand.u32 2147483647, %v375_v50  ;;  %v913_v37 = vcvt.s32.f32 %v912_v0  ;;  %484 = vxpose.xlu0.b32.cont [7/16] %v468_v21, 128  ;;  %v437_v14 = vmin.f32 %v421_v25, 15.0 }
 0x11d   :  { %v909_v54 = vsel %vm903_vm2, %v908_v60, %v374_v53  ;;  %v794_v33 = vand.u32 2147483647, %v793_v12  ;;  %v376_v8 = vmul.f32 %v1387_v59, %v1161_v27  ;;  %v915_v32 = vand.u32 2147483648, %v375_v50 }
 0x11e   :  { %v406_v48 = vadd.f32 %v909_v54, %v781_v43  ;;  %v914_v6 = vand.u32 2147483647, %v913_v37  ;;  %v1714_v2 = vcvt.f32.s32 %v1423_v26  ;;  %v453_v34 = vsub.f32 %v437_v14, %v773_v42 }
 0x11f   :  { %vm1573_vm3 = vcmp.lt.f32.partialorder %v790_v9, 8388608.0  ;;  %v795_v62 = vand.u32 2147483648, %v1398_v51  ;;  %v920_v20 = vcvt.f32.s32 %v376_v8  ;;  %v789_v53 = vsel %vm1562_vm1, %v788_v22, %v1380_v3 }
 0x120   :  { %v801_v38 = vcvt.s32.f32 %v1714_v2  ;;  %v422_v63 = vmax.f32 %v406_v48, 0.0  ;;  %v916_v27 = vor.u32 %v915_v32, %v914_v6  ;;  %v798_v59 = vand.u32 2147483647, %v1423_v26 }
 0x121   :  { %v469_v7 = vmul.f32 %v453_v34, %v1252_v28  ;;  %vm911_vm4 = vcmp.lt.f32.partialorder %v910_v17, 8388608.0  ;;  %v796_v10 = vor.u32 %v795_v62, %v794_v33  ;;  %v921_v42 = vcvt.s32.f32 %v920_v20  ;;  %v1721_v62 = vld [vmem:[#allocation23_spill] sm:$0xff] }
 0x122   :  { %v438_v15 = vmin.f32 %v422_v63, 15.0  ;;  %v917_v23 = vsel %vm911_vm4, %v916_v27, %v375_v50  ;;  %v918_v52 = vand.u32 2147483647, %v376_v8  ;;  %v802_v19 = vand.u32 2147483647, %v801_v38 }
 0x123   :  { %485 = vxpose.xlu0.b32.cont [8/16] %v469_v7, 128  ;;  %v407_v1 = vadd.f32 %v917_v23, %v789_v53  ;;  %v922_v61 = vand.u32 2147483647, %v921_v42  ;;  %v923_v58 = vand.u32 2147483648, %v376_v8  ;;  %v377_v16 = vmul.f32 %v1407_v41, %v1165_v29  ;;  %v1722_v42 = vld [vmem:[#allocation17_spill] sm:$0xff] }
 0x124   :  { %v454_v3 = vsub.f32 %v438_v15, %v781_v43  ;;  %vm1585_vm5 = vcmp.lt.f32.partialorder %v798_v59, 8388608.0  ;;  %v803_v28 = vand.u32 2147483648, %v1423_v26  ;;  %v1719_v11 = vcvt.f32.s32 %v1431_v30 }
 0x125   :  { %v423_v50 = vmax.f32 %v407_v1, 0.0  ;;  %v797_v13 = vsel %vm1573_vm3, %v796_v10, %v1398_v51  ;;  %v924_v45 = vor.u32 %v923_v58, %v922_v61  ;;  %v928_v12 = vcvt.f32.s32 %v377_v16 }
 0x126   :  { %v809_v47 = vcvt.s32.f32 %v1719_v11  ;;  %v470_v57 = vmul.f32 %v454_v3, %v1268_v49  ;;  %vm919_vm6 = vcmp.lt.f32.partialorder %v918_v52, 8388608.0  ;;  %v804_v29 = vor.u32 %v803_v28, %v802_v19 }
 0x127   :  { %v806_v41 = vand.u32 2147483647, %v1431_v30  ;;  %v439_v43 = vmin.f32 %v423_v50, 15.0  ;;  %v925_v24 = vsel %vm919_vm6, %v924_v45, %v376_v8  ;;  %v929_v0 = vcvt.s32.f32 %v928_v12 }
 0x128   :  { %v811_v21 = vand.u32 2147483648, %v1431_v30  ;;  %486 = vxpose.xlu0.b32.cont [9/16] %v470_v57, 128  ;;  %v408_v25 = vadd.f32 %v925_v24, %v797_v13  ;;  %v926_v60 = vand.u32 2147483647, %v377_v16  ;;  %v810_v9 = vand.u32 2147483647, %v809_v47  ;;  %v1724_v24 = vld [vmem:[#allocation18_spill] sm:$0xff] }
 0x129   :  { %v378_v51 = vmul.f32 %v1418_v36, %v1169_v31  ;;  %v455_v22 = vsub.f32 %v439_v43, %v789_v53  ;;  %v930_v17 = vand.u32 2147483647, %v929_v0  ;;  %v931_v37 = vand.u32 2147483648, %v377_v16 }
 0x12a   :  { %v817_v49 = vcvt.s32.f32 %v816_v5  ;;  %v832_v14 = vcvt.f32.s32 %v1525_v56  ;;  %v424_v54 = vmax.f32 %v408_v25, 0.0  ;;  %v805_v33 = vsel %vm1585_vm5, %v804_v29, %v1423_v26 }
 0x12b   :  { %v936_v8 = vcvt.f32.s32 %v378_v51  ;;  %v471_v48 = vmul.f32 %v455_v22, %v1290_v46  ;;  %v932_v6 = vor.u32 %v931_v37, %v930_v17  ;;  %vm807_vm7 = vcmp.lt.f32.partialorder %v806_v41, 8388608.0  ;;  %v1725_v37 = vld [vmem:[#allocation16_spill] sm:$0xff] }
 0x12c   :  { %v812_v32 = vor.u32 %v811_v21, %v810_v9  ;;  %v440_v31 = vmin.f32 %v424_v54, 15.0  ;;  %vm927_vm8 = vcmp.lt.f32.partialorder %v926_v60, 8388608.0  ;;  %v934_v36 = vand.u32 2147483647, %v378_v51 }
 0x12d   :  { %v937_v2 = vcvt.s32.f32 %v936_v8  ;;  %487 = vxpose.xlu0.b32.cont [10/16] %v471_v48, 128  ;;  %v933_v38 = vsel %vm927_vm8, %v932_v6, %v377_v16  ;;  %v939_v5 = vand.u32 2147483648, %v378_v51  ;;  %v818_v34 = vand.u32 2147483647, %v817_v49  ;;  %v1726_v6 = vld [vmem:[#allocation19_spill] sm:$0xff] }
 0x12e   :  { %v379_v20 = vmul.f32 %v1721_v62, %v1720_v44  ;;  %v456_v63 = vsub.f32 %v440_v31, %v797_v13  ;;  %v409_v53 = vadd.f32 %v933_v38, %v805_v33  ;;  %v825_v46 = vcvt.s32.f32 %v824_v40 }
 0x12f   :  { %v938_v26 = vand.u32 2147483647, %v937_v2  ;;  %v813_v27 = vsel %vm807_vm7, %v812_v32, %v1431_v30  ;;  %v814_v59 = vand.u32 2147483647, %v1464_v4  ;;  %v819_v7 = vand.u32 2147483648, %v1464_v4  ;;  %v1723_v30 = vld [vmem:[#allocation15_spill] sm:$0xff] }
 0x130   :  { %v944_v10 = vcvt.f32.s32 %v379_v20  ;;  %v472_v15 = vmul.f32 %v456_v63, %v1722_v42  ;;  %v425_v23 = vmax.f32 %v409_v53, 0.0  ;;  %vm935_vm9 = vcmp.lt.f32.partialorder %v934_v36, 8388608.0  ;;  %v1727_v63 = vld [vmem:[#allocation20_spill] sm:$0xff]  ;;  %v1728_v42 = vld [vmem:[#allocation21_spill] sm:$0xff] }
 0x131   :  { %v940_v52 = vor.u32 %v939_v5, %v938_v26  ;;  %v820_v19 = vor.u32 %v819_v7, %v818_v34  ;;  %v822_v61 = vand.u32 2147483647, %v1488_v39  ;;  %v826_v58 = vand.u32 2147483647, %v825_v46 }
 0x132   :  { %v945_v1 = vcvt.s32.f32 %v944_v10  ;;  %488 = vxpose.xlu0.b32.cont [11/16] %v472_v15, 128  ;;  %v441_v16 = vmin.f32 %v425_v23, 15.0  ;;  %v942_v3 = vand.u32 2147483647, %v379_v20  ;;  %v380_v18 = vmul.f32 %v1475_v35, %v1723_v30 }
 0x133   :  { %v941_v40 = vsel %vm935_vm9, %v940_v52, %v378_v51  ;;  %v947_v47 = vand.u32 2147483648, %v379_v20  ;;  %v827_v50 = vand.u32 2147483648, %v1488_v39  ;;  %vm815_vm10 = vcmp.lt.f32.partialorder %v814_v59, 8388608.0 }
 0x134   :  { %v410_v28 = vadd.f32 %v941_v40, %v813_v27  ;;  %v946_v11 = vand.u32 2147483647, %v945_v1  ;;  %v457_v13 = vsub.f32 %v441_v16, %v805_v33  ;;  %v952_v45 = vcvt.f32.s32 %v380_v18  ;;  %v1729_v1 = vld [vmem:[#allocation22_spill] sm:$0xff]  ;;  %v526_v40 = vld [vmem:[#allocation4] sm:$0xff] }
 0x135   :  { %v833_v12 = vcvt.s32.f32 %v832_v14  ;;  %v821_v29 = vsel %vm815_vm10, %v820_v19, %v1464_v4  ;;  %v828_v43 = vor.u32 %v827_v50, %v826_v58  ;;  %vm943_vm11 = vcmp.lt.f32.partialorder %v942_v3, 8388608.0  ;;  %v1730_v58 = vld [vmem:[#allocation13_spill] sm:$0xff] }
 0x136   :  { %v426_v57 = vmax.f32 %v410_v28, 0.0  ;;  %v948_v41 = vor.u32 %v947_v47, %v946_v11  ;;  %v473_v0 = vmul.f32 %v457_v13, %v1724_v24  ;;  %vm823_vm12 = vcmp.lt.f32.partialorder %v822_v61, 8388608.0 }
 0x137   :  { %v953_v21 = vcvt.s32.f32 %v952_v45  ;;  %v950_v60 = vand.u32 2147483647, %v380_v18  ;;  %v955_v9 = vand.u32 2147483648, %v380_v18  ;;  %v834_v17 = vand.u32 2147483647, %v833_v12 }
 0x138   :  { %v442_v35 = vmin.f32 %v426_v57, 15.0  ;;  %v949_v25 = vsel %vm943_vm11, %v948_v41, %v379_v20  ;;  %489 = vxpose.xlu0.b32.cont [12/16] %v473_v0, 128  ;;  %v381_v49 = vmul.f32 %v1511_v55, %v1725_v37  ;;  %v829_v4 = vsel %vm823_vm12, %v828_v43, %v1488_v39 }
 0x139   :  { %v411_v51 = vadd.f32 %v949_v25, %v821_v29  ;;  %v954_v22 = vand.u32 2147483647, %v953_v21  ;;  %v835_v8 = vand.u32 2147483648, %v1525_v56  ;;  %vm951_vm13 = vcmp.lt.f32.partialorder %v950_v60, 8388608.0  ;;  %v527_v25 = vld [vmem:[#allocation4 + $0x8] sm:$0xff] }
 0x13a   :  { %v458_v14 = vsub.f32 %v442_v35, %v813_v27  ;;  %v960_v48 = vcvt.f32.s32 %v381_v49  ;;  %v830_v31 = vand.u32 2147483647, %v1525_v56  ;;  %v958_v55 = vand.u32 2147483647, %v381_v49 }
 0x13b   :  { %v427_v54 = vmax.f32 %v411_v51, 0.0  ;;  %v956_v33 = vor.u32 %v955_v9, %v954_v22  ;;  %v836_v38 = vor.u32 %v835_v8, %v834_v17  ;;  %v963_v39 = vand.u32 2147483648, %v381_v49  ;;  %v656_v9 = vld [vmem:[%s1645_s3] ss:$0 sm:$0xff] }
 0x13c   :  { %v474_v32 = vmul.f32 %v458_v14, %v1726_v6  ;;  %v961_v5 = vcvt.s32.f32 %v960_v48  ;;  %vm831_vm14 = vcmp.lt.f32.partialorder %v830_v31, 8388608.0  ;;  %vm959_vm15 = vcmp.lt.f32.partialorder %v958_v55, 8388608.0 }
 0x13d   :  { %v443_v36 = vmin.f32 %v427_v54, 15.0  ;;  %v957_v2 = vsel %vm951_vm13, %v956_v33, %v380_v18  ;;  %v837_v26 = vsel %vm831_vm14, %v836_v38, %v1525_v56  ;;  %v1731_v16 = vmax.f32 %v1730_v58, 1e-05 }
 0x13e   :  { %490 = vxpose.xlu0.b32.cont [13/16] %v474_v32, 128  ;;  %v412_v34 = vadd.f32 %v957_v2, %v829_v4  ;;  %v962_v62 = vand.u32 2147483647, %v961_v5 }
 0x13f   :  { %v459_v44 = vsub.f32 %v443_v36, %v821_v29  ;;  %1003 = vrcp.f32 %v1731_v16 }
 0x140   :  { %v428_v20 = vmax.f32 %v412_v34, 0.0  ;;  %v964_v46 = vor.u32 %v963_v39, %v962_v62 }
 0x141   :  { %v475_v53 = vmul.f32 %v459_v44, %v1727_v63 }
 0x142   :  { %v444_v27 = vmin.f32 %v428_v20, 15.0  ;;  %v965_v59 = vsel %vm959_vm15, %v964_v46, %v381_v49 }
 0x143   :  { %491 = vxpose.xlu0.b32.cont [14/16] %v475_v53, 128  ;;  %v413_v10 = vadd.f32 %v965_v59, %v837_v26 }
 0x144   :  { %v460_v7 = vsub.f32 %v444_v27, %v829_v4 }
 0x145   :  { %v429_v23 = vmax.f32 %v413_v10, 0.0 }
 0x146   :  { %v476_v15 = vmul.f32 %v460_v7, %v1728_v42 }
 0x147   :  { %v445_v52 = vmin.f32 %v429_v23, 15.0 }
 0x148   :  { %492 = vxpose.xlu0.b32.cont [15/16] %v476_v15, 128 }
 0x149   :  { %v461_v19 = vsub.f32 %v445_v52, %v837_v26 }
 0x14b   :  { %v477_v61 = vmul.f32 %v461_v19, %v1729_v1 }
 0x14c   :  { %v1004_v56 = vpop.eup %1003 }
 0x14d   :  { %493 = vxpose.xlu0.b32.end [16/16] %v477_v61, 128  ;;  %54 = vst [vmem:[#allocation3] sm:$0x1] %v1004_v56 }
 0x154   :  { %v655_v3 = vld [vmem:[#allocation3] ss:$0 sm:$0xff] }
 0x155   :  { %v535_v30 = vmul.f32 %v655_v3, %v526_v40  ;;  %v536_v60 = vmul.f32 %v655_v3, %v527_v25 }
 0x157   :  { %707 = vmatprep.mubr.f32.mxu0 %v535_v30 }
 0x18d   :  { %v494_v18 = vpop.trf.xlu0 }
 0x191   :  { %v495_v28 = vpop.trf.xlu0 }
 0x195   :  { %v496_v11 = vpop.trf.xlu0 }
 0x199   :  { %v497_v47 = vpop.trf.xlu0 }
 0x19d   :  { %v498_v50 = vpop.trf.xlu0 }
 0x1a1   :  { %v499_v13 = vpop.trf.xlu0 }
 0x1a5   :  { %v500_v45 = vpop.trf.xlu0 }
 0x1a9   :  { %v501_v12 = vpop.trf.xlu0 }
 0x1ad   :  { %v502_v57 = vpop.trf.xlu0 }
 0x1b1   :  { %v503_v29 = vpop.trf.xlu0 }
 0x1b5   :  { %v504_v41 = vpop.trf.xlu0 }
 0x1b9   :  { %v505_v43 = vpop.trf.xlu0 }
 0x1bd   :  { %v506_v24 = vpop.trf.xlu0 }
 0x1c1   :  { %v507_v0 = vpop.trf.xlu0 }
 0x1c5   :  { %v508_v21 = vpop.trf.xlu0 }
 0x1c9   :  { %v509_v35 = vpop.trf.xlu0 }
 0x1ca   :  { %675 = vmatprep.subr.mxu0 %v509_v35 }
 0x1cb   :  { %676 = vmatpush3.msra.mxu0 %v509_v35 }
 0x1cc   :  { %677 = vmatprep.subr.mxu0 %v508_v21 }
 0x1cd   :  { %678 = vmatpush3.msra.mxu0 %v508_v21 }
 0x1ce   :  { %679 = vmatprep.subr.mxu0 %v507_v0 }
 0x1cf   :  { %680 = vmatpush3.msra.mxu0 %v507_v0 }
 0x1d0   :  { %681 = vmatprep.subr.mxu0 %v506_v24 }
 0x1d1   :  { %682 = vmatpush3.msra.mxu0 %v506_v24 }
 0x1d2   :  { %683 = vmatprep.subr.mxu0 %v505_v43 }
 0x1d3   :  { %684 = vmatpush3.msra.mxu0 %v505_v43 }
 0x1d4   :  { %685 = vmatprep.subr.mxu0 %v504_v41 }
 0x1d5   :  { %686 = vmatpush3.msra.mxu0 %v504_v41 }
 0x1d6   :  { %687 = vmatprep.subr.mxu0 %v503_v29 }
 0x1d7   :  { %688 = vmatpush3.msra.mxu0 %v503_v29 }
 0x1d8   :  { %689 = vmatprep.subr.mxu0 %v502_v57 }
 0x1d9   :  { %690 = vmatpush3.msra.mxu0 %v502_v57 }
 0x1da   :  { %691 = vmatprep.subr.mxu0 %v501_v12 }
 0x1db   :  { %692 = vmatpush3.msra.mxu0 %v501_v12 }
 0x1dc   :  { %693 = vmatprep.subr.mxu0 %v500_v45 }
 0x1dd   :  { %694 = vmatpush3.msra.mxu0 %v500_v45 }
 0x1de   :  { %695 = vmatprep.subr.mxu0 %v499_v13 }
 0x1df   :  { %696 = vmatpush3.msra.mxu0 %v499_v13 }
 0x1e0   :  { %697 = vmatprep.subr.mxu0 %v498_v50 }
 0x1e1   :  { %698 = vmatpush3.msra.mxu0 %v498_v50 }
 0x1e2   :  { %699 = vmatprep.subr.mxu0 %v497_v47 }
 0x1e3   :  { %700 = vmatpush3.msra.mxu0 %v497_v47 }
 0x1e4   :  { %701 = vmatprep.subr.mxu0 %v496_v11 }
 0x1e5   :  { %702 = vmatpush3.msra.mxu0 %v496_v11 }
 0x1e6   :  { %703 = vmatprep.subr.mxu0 %v495_v28 }
 0x1e7   :  { %704 = vmatpush3.msra.mxu0 %v495_v28 }
 0x1e8   :  { %705 = vmatprep.subr.mxu0 %v494_v18 }
 0x1e9   :  { %706 = vmatpush3.msra.mxu0 %v494_v18 }
 0x1ea   :  { %708 = vmatmul.mubr.f32.vlgmr.msra.gmra.mxu0 %v536_v60 }
 0x2aa   :  { %v709_v51 = vpop.f32.mrf.mxu0 }
 0x2ab   :  { %v632_v22 = vadd.f32 %v709_v51, %v656_v9 }
 0x2ac   :  { %v626_v17 = vpop.f32.mrf.mxu0 }
 0x2ad   :  { %636 = vst [vmem:[#allocation9 + $0x8] sm:$0xff] %v632_v22  ;;  %v627_v37 = vadd.f32 %v656_v9, %v626_v17 }
 0x2af   :  { %635 = vst [vmem:[#allocation9] sm:$0xff] %v627_v37 }
 0x2b0   :  { %1056 = shalt.err (!%p1053_p0)
}
 0x2b1   :  { %648 = dma.vmem_to_hbm [thread:$0]  %s643_s29, 256, %s1646_s4, [#allocation6], %s1072_s18, %s1072_s18, %s1073_s19  }
 0x2b2   :  { %1069 = dma.done.wait [#allocation6], 256  }
 0x2b3   :  { %1070 = vsyncadd [#allocation6], 4294967040 }
 0x2b4   :  { %652 = vsyncpa [#allocation5], 1 }
 0x2b5   :  { %653 = vsyncpa [#allocation8], 1 }
 0x2b6   :  { %654 = vsyncpa [#allocation6], 1 }

</bundles_post_ra>
